<compile_context>
chip_gen: v7x
topology: tpu7x:2x2x1
jax: 0.10.0
libtpu: 0.0.40
codegen_flags: <defaults>
</compile_context>

<pallas_src>
import functools
import math

import jax
import jax.numpy as jnp
from jax.experimental import pallas as pl
from jax.experimental.pallas import tpu as pltpu

SMOOTH = 1e-7
_LANES = 128          # lane width of a vreg
_SEG = 8              # sublane rows per per-class accumulator segment


def _vmem_capacity_bytes():
    try:
        return int(pltpu.get_tpu_info().vmem_capacity_bytes)
    except Exception:                       # fallback: assume v7x (smallest VMEM)
        return 64 * 1024 * 1024


def _pick_block_rows(R, C, x_itemsize):
    """Rows (of 128 voxels) per grid step.

    Budgets *everything* that lives in VMEM per step: 2x double-buffered
    logits block, 2x label block, the explicit exp(x - m) scratch and ~6
    live (rows, 128) f32 temporaries, against a generation-aware budget.
    ~2-4 MiB streamed per step already saturates the HBM roofline, so the
    row count is also capped at 2048.
    """
    budget = min(16 * 2 ** 20, _vmem_capacity_bytes() // 4)
    per_row = (2 * C * _LANES * x_itemsize      # logits, double-buffered
               + 2 * _LANES * 4                 # labels (worst case int32)
               + C * _LANES * 4                 # exp(x - m) scratch
               + 6 * _LANES * 4)                # live f32 temporaries
    cap = min(max(8, budget // per_row), 2048)
    if R <= cap:
        return R                                # single full-extent tile
    if cap >= 32:
        return (cap // 32) * 32                 # keep int8 label tiles native
    return max(8, (cap // 8) * 8)


def _dice_kernel(x_ref, t_ref, out_ref, exp_ref, *, num_classes, block_rows,
                 valid_rows, tiles_per_split, needs_row_mask, needs_elem_mask):
    # Grid = (N, splits, tiles).  Blocks:
    #   x_ref:   (1, C, ss, 128)  logits tile (model dtype)
    #   t_ref:   (1, 1, ss, 128)  int8/int32 labels (-1 on padded voxels)
    #   out_ref: (1, 1, 2*C*8, 128) resident per-(n, split) accumulator:
    #            rows [c*8,(c+1)*8) = intersection of class c,
    #            rows [(C+c)*8, ...) = denominator of class c.
    #   exp_ref: (C, ss, 128) f32 scratch holding exp(x - m).
    C = num_classes
    ss = block_rows
    t_idx = pl.program_id(2)

    @pl.when(t_idx == 0)
    def _init():
        out_ref[...] = jnp.zeros_like(out_ref)

    if needs_row_mask:
        # Rows past `valid_rows` (grid-tail / phantom split tiles) hold
        # undefined data: zero the logits BEFORE exp, force label to -1.
        tile_id = pl.program_id(1) * tiles_per_split + t_idx
        row_ids = jax.lax.broadcasted_iota(jnp.int32, (ss, 1), 0)
        row_valid = (tile_id * ss + row_ids) < valid_rows        # (ss, 1) bool
    else:
        row_valid = None

    def load_logits(c):
        v = x_ref[0, c].astype(jnp.float32)                      # (ss, 128)
        if row_valid is not None:
            v = jnp.where(row_valid, v, 0.0)                     # NaN/Inf safety
        return v

    # Channel softmax with classes on the leading (non-layout) axis: the
    # running max / sum over C are plain VPU ops and there is exactly one
    # exact reciprocal per voxel (keeps 1e-5 parity with the reference).
    m = load_logits(0)
    for c in range(1, C):
        m = jnp.maximum(m, load_logits(c))
    z = None
    for c in range(C):
        e = jnp.exp(load_logits(c) - m)
        exp_ref[c] = e                                           # stash, no recompute
        z = e if z is None else z + e
    inv = pl.reciprocal(z, approx=False)

    lab = t_ref[0, 0].astype(jnp.int32)                          # (ss, 128)
    if row_valid is not None:
        lab = jnp.where(row_valid, lab, -1)
    valid = (lab >= 0).astype(jnp.float32) if needs_elem_mask else None

    fold_rows = _SEG if ss % _SEG == 0 else 1

    def fold(v):
        # (ss, 128) -> (fold_rows, 128) partial sums; VPU adds in the common
        # aligned case, a tiny sublane reduce only for very small tiles.
        if ss == _SEG:
            return v
        if ss % _SEG == 0:
            return jnp.sum(v.reshape(ss // _SEG, _SEG, _LANES), axis=0)
        return jnp.sum(v, axis=0, keepdims=True)

    for c in range(C):
        p = exp_ref[c] * inv                                     # softmax prob
        if valid is not None:
            p = p * valid                                        # padded voxels: no denom mass
        onehot = (lab == c).astype(jnp.float32)                  # label -1 never matches
        i0 = c * _SEG
        d0 = (C + c) * _SEG
        out_ref[0, 0, i0:i0 + fold_rows, :] += fold(onehot * p)
        out_ref[0, 0, d0:d0 + fold_rows, :] += fold(p + onehot)


def dice_loss(inputs, targets, *, smooth=SMOOTH, block_rows=None):
    """inputs:  (N, C, D, H, W) float logits (f32 or bf16)
       targets: (N, 1, D, H, W) or (N, D, H, W) integer labels in [0, C)
       returns: scalar mean dice loss (PyTorch DiceLoss defaults).
       block_rows: optional override of rows-per-tile (multiple of 8), for tests."""
    N, C = inputs.shape[0], inputs.shape[1]
    if C < 2:
        raise ValueError("softmax=True DiceLoss requires more than one channel")
    if targets.ndim == inputs.ndim:                 # (N, 1, D, H, W) -> (N, D, H, W)
        targets = jnp.squeeze(targets, axis=1)
    S = math.prod(inputs.shape[2:])

    x = inputs.reshape(N, C, S)                     # keep the model dtype
    t = targets.reshape(N, 1, S)

    lane_pad = (-S) % _LANES
    R = (S + lane_pad) // _LANES                    # rows of 128 voxels

    if block_rows is None:
        ss = _pick_block_rows(R, C, x.dtype.itemsize)
    else:
        ss = min(int(block_rows), R)

    # int8 labels (HBM-bound kernel -> near-linear win) when the tile sits on
    # the native int8 (32, 128) layout and class ids fit.
    tgt_dtype = jnp.int8 if (C <= 127 and ss % 32 == 0) else jnp.int32
    t = t.astype(tgt_dtype)

    # Lane padding only when S % 128 != 0: labels padded with -1 (never
    # one-hot), logits with 0; padded softmax mass is masked out in-kernel.
    if lane_pad:
        x = jnp.pad(x, ((0, 0), (0, 0), (0, lane_pad)))
        t = jnp.pad(t, ((0, 0), (0, 0), (0, lane_pad)), constant_values=-1)
    x = x.reshape(N, C, R, _LANES)                  # sublane-dense spatial layout
    t = t.reshape(N, 1, R, _LANES)

    total_tiles = -(-R // ss)
    splits = 2 if total_tiles >= 2 else 1           # keep both v7x TCs busy at N == 1
    tps = -(-total_tiles // splits)                 # tiles per split
    has_phantom = splits * tps > total_tiles        # last split may own a dummy step

    needs_row_mask = has_phantom or (total_tiles * ss != R)
    needs_elem_mask = needs_row_mask or (lane_pad > 0)

    if has_phantom:
        def data_idx(n, sp, tt):
            # Clamp phantom steps onto a real block (their contribution is
            # fully masked by the row-validity check in the kernel).
            return (n, 0, jnp.minimum(sp * tps + tt, total_tiles - 1), 0)
    else:
        def data_idx(n, sp, tt):
            return (n, 0, sp * tps + tt, 0)

    kernel = functools.partial(
        _dice_kernel, num_classes=C, block_rows=ss, valid_rows=R,
        tiles_per_split=tps, needs_row_mask=needs_row_mask,
        needs_elem_mask=needs_elem_mask)

    vmem_limit = int(min(64 * 2 ** 20, max(32 * 2 ** 20, _vmem_capacity_bytes() // 2)))

    parts = pl.pallas_call(
        kernel,
        out_shape=jax.ShapeDtypeStruct((N, splits, 2 * C * _SEG, _LANES), jnp.float32),
        grid_spec=pltpu.PrefetchScalarGridSpec(
            num_scalar_prefetch=0,
            grid=(N, splits, tps),                  # reduction (tiles) axis last
            in_specs=[
                pl.BlockSpec((1, C, ss, _LANES), data_idx),
                pl.BlockSpec((1, 1, ss, _LANES), data_idx),
            ],
            # Same output block across the tile axis -> resident accumulator.
            out_specs=pl.BlockSpec((1, 1, 2 * C * _SEG, _LANES),
                                   lambda n, sp, tt: (n, sp, 0, 0)),
            scratch_shapes=[
                pltpu.VMEM((C, ss, _LANES), jnp.float32),   # exp(x - m) stash
            ],
        ),
        compiler_params=pltpu.CompilerParams(
            dimension_semantics=("parallel", "parallel", "arbitrary"),
            vmem_limit_bytes=vmem_limit,
        ),
    )(x, t)

    # Tiny finalize in plain JAX: segment/lane reduce + dice ratio + mean.
    sums = parts.reshape(N, splits, 2, C, _SEG, _LANES).sum(axis=(1, 4, 5))
    inter, denom = sums[:, 0, :], sums[:, 1, :]
    loss = 1.0 - (2.0 * inter + smooth) / (denom + smooth)
    return jnp.mean(loss)                           # reduction='mean'


def _reference(inputs, targets):
    """Pure-JAX reference mirroring the PyTorch forward (defaults)."""
    C = inputs.shape[1]
    p = jax.nn.softmax(inputs.astype(jnp.float32), axis=1)
    tgt = jnp.squeeze(targets, axis=1).astype(jnp.int32)      # (N, D, H, W)
    onehot = jax.nn.one_hot(tgt, C, dtype=jnp.float32)        # (N, D, H, W, C)
    onehot = jnp.transpose(onehot, (0, 4, 1, 2, 3))           # (N, C, D, H, W)
    reduce_axes = tuple(range(2, inputs.ndim))
    inter = jnp.sum(onehot * p, axis=reduce_axes)
    denom = jnp.sum(p, axis=reduce_axes) + jnp.sum(onehot, axis=reduce_axes)
    loss = 1.0 - (2.0 * inter + SMOOTH) / (denom + SMOOTH)
    return jnp.mean(loss)


if __name__ == "__main__":
    key = jax.random.PRNGKey(0)
    ks = jax.random.split(key, 8)

    def run_case(kx, kt, shape, block_rows=None):
        N, C = shape[0], shape[1]
        inputs = jax.random.normal(kx, shape, dtype=jnp.float32)
        targets = jax.random.randint(kt, (N, 1) + shape[2:], 0, C, dtype=jnp.int32)
        out = jax.block_until_ready(dice_loss(inputs, targets, block_rows=block_rows))
        ref = _reference(inputs, targets)
        assert jnp.allclose(out, ref, atol=1e-5, rtol=1e-5), (shape, out, ref)

    # 1) aligned spatial size, single tile, no masking at all.
    run_case(ks[0], ks[1], (2, 4, 4, 8, 8))
    # 2) ragged spatial size -> minimal lane padding + label(-1) masking.
    run_case(ks[2], ks[3], (2, 4, 3, 5, 7))
    # 3) multi-tile + 2-way spatial split (keeps v7x's 2nd TC busy at N=1) + int8 labels.
    run_case(ks[4], ks[5], (1, 4, 16, 16, 32), block_rows=32)
    # 4) odd tile count -> phantom-tile clamp + in-kernel OOB-row masking.
    run_case(ks[6], ks[7], (1, 4, 10, 16, 32), block_rows=16)

    print("KERNEL_OK")
</pallas_src>

<mosaic_0001>
module attributes {stable_mosaic.version = 11 : i64} {
  func.func @_dice_kernel(%arg0: i32, %arg1: i32, %arg2: i32, %arg3: memref<1x4x2x128xf32, #tpu.memory_space<vmem>>, %arg4: memref<1x1x2x128xi32, #tpu.memory_space<vmem>>, %arg5: memref<1x1x64x128xf32, #tpu.memory_space<vmem>>, %arg6: memref<4x2x128xf32, #tpu.memory_space<vmem>>) attributes {dimension_semantics = [#tpu.dimension_semantics<parallel>, #tpu.dimension_semantics<parallel>, #tpu.dimension_semantics<arbitrary>], iteration_bounds = array<i64: 2, 1, 1>, scalar_prefetch = 0 : i64, scratch_operands = 1 : i64, tpu.core_type = #tpu.core_type<tc>, window_params = [{transform_indices = @transform_0, window_bounds = array<i64: 1, 4, 2, 128>}, {transform_indices = @transform_1, window_bounds = array<i64: 1, 1, 2, 128>}, {transform_indices = @transform_2, window_bounds = array<i64: 1, 1, 64, 128>}]} {
    %c0_i32 = arith.constant 0 : i32
    %0 = arith.cmpi eq, %arg2, %c0_i32 : i32
    %1 = arith.extui %0 : i1 to i32
    %c0_i32_0 = arith.constant 0 : i32
    %2 = arith.cmpi ne, %1, %c0_i32_0 : i32
    scf.if %2 {
      %cst_122 = arith.constant 0.000000e+00 : f32
      %148 = vector.broadcast %cst_122 : f32 to vector<1x1x64x128xf32>
      %c0_123 = arith.constant 0 : index
      %c0_124 = arith.constant 0 : index
      %c0_125 = arith.constant 0 : index
      %c0_126 = arith.constant 0 : index
      %149 = vector.load %arg5[%c0_123, %c0_124, %c0_125, %c0_126] : memref<1x1x64x128xf32, #tpu.memory_space<vmem>>, vector<1x1x64x128xf32>
      tpu.vector_store %arg5[%c0_123, %c0_124, %c0_125, %c0_126], %148 {strides = array<i32>} : memref<1x1x64x128xf32, #tpu.memory_space<vmem>>, vector<1x1x64x128xf32>,
    } else {
    }
    %c0 = arith.constant 0 : index
    %c0_1 = arith.constant 0 : index
    %c0_2 = arith.constant 0 : index
    %c0_3 = arith.constant 0 : index
    %3 = vector.load %arg3[%c0, %c0_1, %c0_2, %c0_3] : memref<1x4x2x128xf32, #tpu.memory_space<vmem>>, vector<1x1x2x128xf32>
    %4 = vector.shape_cast %3 : vector<1x1x2x128xf32> to vector<2x128xf32>
    %c0_4 = arith.constant 0 : index
    %c1 = arith.constant 1 : index
    %c0_5 = arith.constant 0 : index
    %c0_6 = arith.constant 0 : index
    %5 = vector.load %arg3[%c0_4, %c1, %c0_5, %c0_6] : memref<1x4x2x128xf32, #tpu.memory_space<vmem>>, vector<1x1x2x128xf32>
    %6 = vector.shape_cast %5 : vector<1x1x2x128xf32> to vector<2x128xf32>
    %7 = arith.maximumf %4, %6 : vector<2x128xf32>
    %c0_7 = arith.constant 0 : index
    %c2 = arith.constant 2 : index
    %c0_8 = arith.constant 0 : index
    %c0_9 = arith.constant 0 : index
    %8 = vector.load %arg3[%c0_7, %c2, %c0_8, %c0_9] : memref<1x4x2x128xf32, #tpu.memory_space<vmem>>, vector<1x1x2x128xf32>
    %9 = vector.shape_cast %8 : vector<1x1x2x128xf32> to vector<2x128xf32>
    %10 = arith.maximumf %7, %9 : vector<2x128xf32>
    %c0_10 = arith.constant 0 : index
    %c3 = arith.constant 3 : index
    %c0_11 = arith.constant 0 : index
    %c0_12 = arith.constant 0 : index
    %11 = vector.load %arg3[%c0_10, %c3, %c0_11, %c0_12] : memref<1x4x2x128xf32, #tpu.memory_space<vmem>>, vector<1x1x2x128xf32>
    %12 = vector.shape_cast %11 : vector<1x1x2x128xf32> to vector<2x128xf32>
    %13 = arith.maximumf %10, %12 : vector<2x128xf32>
    %c0_13 = arith.constant 0 : index
    %c0_14 = arith.constant 0 : index
    %c0_15 = arith.constant 0 : index
    %c0_16 = arith.constant 0 : index
    %14 = vector.load %arg3[%c0_13, %c0_14, %c0_15, %c0_16] : memref<1x4x2x128xf32, #tpu.memory_space<vmem>>, vector<1x1x2x128xf32>
    %15 = vector.shape_cast %14 : vector<1x1x2x128xf32> to vector<2x128xf32>
    %16 = arith.subf %15, %13 : vector<2x128xf32>
    %17 = math.exp %16 : vector<2x128xf32>
    %c0_17 = arith.constant 0 : index
    %c0_18 = arith.constant 0 : index
    %c0_19 = arith.constant 0 : index
    %18 = vector.load %arg6[%c0_17, %c0_18, %c0_19] : memref<4x2x128xf32, #tpu.memory_space<vmem>>, vector<1x2x128xf32>
    %19 = vector.shape_cast %18 : vector<1x2x128xf32> to vector<2x128xf32>
    %20 = vector.shape_cast %17 : vector<2x128xf32> to vector<1x2x128xf32>
    tpu.vector_store %arg6[%c0_17, %c0_18, %c0_19], %20 {strides = array<i32>} : memref<4x2x128xf32, #tpu.memory_space<vmem>>, vector<1x2x128xf32>,
    %c0_20 = arith.constant 0 : index
    %c1_21 = arith.constant 1 : index
    %c0_22 = arith.constant 0 : index
    %c0_23 = arith.constant 0 : index
    %21 = vector.load %arg3[%c0_20, %c1_21, %c0_22, %c0_23] : memref<1x4x2x128xf32, #tpu.memory_space<vmem>>, vector<1x1x2x128xf32>
    %22 = vector.shape_cast %21 : vector<1x1x2x128xf32> to vector<2x128xf32>
    %23 = arith.subf %22, %13 : vector<2x128xf32>
    %24 = math.exp %23 : vector<2x128xf32>
    %c1_24 = arith.constant 1 : index
    %c0_25 = arith.constant 0 : index
    %c0_26 = arith.constant 0 : index
    %25 = vector.load %arg6[%c1_24, %c0_25, %c0_26] : memref<4x2x128xf32, #tpu.memory_space<vmem>>, vector<1x2x128xf32>
    %26 = vector.shape_cast %25 : vector<1x2x128xf32> to vector<2x128xf32>
    %27 = vector.shape_cast %24 : vector<2x128xf32> to vector<1x2x128xf32>
    tpu.vector_store %arg6[%c1_24, %c0_25, %c0_26], %27 {strides = array<i32>} : memref<4x2x128xf32, #tpu.memory_space<vmem>>, vector<1x2x128xf32>,
    %28 = arith.addf %17, %24 : vector<2x128xf32>
    %c0_27 = arith.constant 0 : index
    %c2_28 = arith.constant 2 : index
    %c0_29 = arith.constant 0 : index
    %c0_30 = arith.constant 0 : index
    %29 = vector.load %arg3[%c0_27, %c2_28, %c0_29, %c0_30] : memref<1x4x2x128xf32, #tpu.memory_space<vmem>>, vector<1x1x2x128xf32>
    %30 = vector.shape_cast %29 : vector<1x1x2x128xf32> to vector<2x128xf32>
    %31 = arith.subf %30, %13 : vector<2x128xf32>
    %32 = math.exp %31 : vector<2x128xf32>
    %c2_31 = arith.constant 2 : index
    %c0_32 = arith.constant 0 : index
    %c0_33 = arith.constant 0 : index
    %33 = vector.load %arg6[%c2_31, %c0_32, %c0_33] : memref<4x2x128xf32, #tpu.memory_space<vmem>>, vector<1x2x128xf32>
    %34 = vector.shape_cast %33 : vector<1x2x128xf32> to vector<2x128xf32>
    %35 = vector.shape_cast %32 : vector<2x128xf32> to vector<1x2x128xf32>
    tpu.vector_store %arg6[%c2_31, %c0_32, %c0_33], %35 {strides = array<i32>} : memref<4x2x128xf32, #tpu.memory_space<vmem>>, vector<1x2x128xf32>,
    %36 = arith.addf %28, %32 : vector<2x128xf32>
    %c0_34 = arith.constant 0 : index
    %c3_35 = arith.constant 3 : index
    %c0_36 = arith.constant 0 : index
    %c0_37 = arith.constant 0 : index
    %37 = vector.load %arg3[%c0_34, %c3_35, %c0_36, %c0_37] : memref<1x4x2x128xf32, #tpu.memory_space<vmem>>, vector<1x1x2x128xf32>
    %38 = vector.shape_cast %37 : vector<1x1x2x128xf32> to vector<2x128xf32>
    %39 = arith.subf %38, %13 : vector<2x128xf32>
    %40 = math.exp %39 : vector<2x128xf32>
    %c3_38 = arith.constant 3 : index
    %c0_39 = arith.constant 0 : index
    %c0_40 = arith.constant 0 : index
    %41 = vector.load %arg6[%c3_38, %c0_39, %c0_40] : memref<4x2x128xf32, #tpu.memory_space<vmem>>, vector<1x2x128xf32>
    %42 = vector.shape_cast %41 : vector<1x2x128xf32> to vector<2x128xf32>
    %43 = vector.shape_cast %40 : vector<2x128xf32> to vector<1x2x128xf32>
    tpu.vector_store %arg6[%c3_38, %c0_39, %c0_40], %43 {strides = array<i32>} : memref<4x2x128xf32, #tpu.memory_space<vmem>>, vector<1x2x128xf32>,
    %44 = arith.addf %36, %40 : vector<2x128xf32>
    %45 = tpu.reciprocal %44 : vector<2x128xf32> -> vector<2x128xf32>
    %c0_41 = arith.constant 0 : index
    %c0_42 = arith.constant 0 : index
    %c0_43 = arith.constant 0 : index
    %c0_44 = arith.constant 0 : index
    %46 = vector.load %arg4[%c0_41, %c0_42, %c0_43, %c0_44] : memref<1x1x2x128xi32, #tpu.memory_space<vmem>>, vector<1x1x2x128xi32>
    %47 = vector.shape_cast %46 : vector<1x1x2x128xi32> to vector<2x128xi32>
    %c0_45 = arith.constant 0 : index
    %c0_46 = arith.constant 0 : index
    %c0_47 = arith.constant 0 : index
    %48 = vector.load %arg6[%c0_45, %c0_46, %c0_47] : memref<4x2x128xf32, #tpu.memory_space<vmem>>, vector<1x2x128xf32>
    %49 = vector.shape_cast %48 : vector<1x2x128xf32> to vector<2x128xf32>
    %50 = arith.mulf %49, %45 : vector<2x128xf32>
    %c0_i32_48 = arith.constant 0 : i32
    %51 = vector.broadcast %c0_i32_48 : i32 to vector<2x128xi32>
    %52 = arith.cmpi eq, %47, %51 : vector<2x128xi32>
    %53 = arith.extui %52 : vector<2x128xi1> to vector<2x128xi32>
    %54 = arith.sitofp %53 : vector<2x128xi32> to vector<2x128xf32>
    %c0_49 = arith.constant 0 : index
    %c0_50 = arith.constant 0 : index
    %c0_51 = arith.constant 0 : index
    %c0_52 = arith.constant 0 : index
    %55 = vector.load %arg5[%c0_49, %c0_50, %c0_51, %c0_52] : memref<1x1x64x128xf32, #tpu.memory_space<vmem>>, vector<1x1x1x128xf32>
    %56 = vector.shape_cast %55 : vector<1x1x1x128xf32> to vector<1x128xf32>
    %57 = arith.mulf %54, %50 : vector<2x128xf32>
    %cst = arith.constant dense<0.000000e+00> : vector<128xf32>
    %58 = vector.multi_reduction <add>, %57, %cst [0] : vector<2x128xf32> to vector<128xf32>
    %59 = vector.shape_cast %58 : vector<128xf32> to vector<1x128xf32>
    %60 = arith.addf %56, %59 : vector<1x128xf32>
    %c0_53 = arith.constant 0 : index
    %c0_54 = arith.constant 0 : index
    %c0_55 = arith.constant 0 : index
    %c0_56 = arith.constant 0 : index
    %61 = vector.load %arg5[%c0_53, %c0_54, %c0_55, %c0_56] : memref<1x1x64x128xf32, #tpu.memory_space<vmem>>, vector<1x1x1x128xf32>
    %62 = vector.shape_cast %61 : vector<1x1x1x128xf32> to vector<1x128xf32>
    %63 = vector.shape_cast %60 : vector<1x128xf32> to vector<1x1x1x128xf32>
    tpu.vector_store %arg5[%c0_53, %c0_54, %c0_55, %c0_56], %63 {strides = array<i32>} : memref<1x1x64x128xf32, #tpu.memory_space<vmem>>, vector<1x1x1x128xf32>,
    %c0_57 = arith.constant 0 : index
    %c0_58 = arith.constant 0 : index
    %c32 = arith.constant 32 : index
    %c0_59 = arith.constant 0 : index
    %64 = vector.load %arg5[%c0_57, %c0_58, %c32, %c0_59] : memref<1x1x64x128xf32, #tpu.memory_space<vmem>>, vector<1x1x1x128xf32>
    %65 = vector.shape_cast %64 : vector<1x1x1x128xf32> to vector<1x128xf32>
    %66 = arith.addf %50, %54 : vector<2x128xf32>
    %cst_60 = arith.constant dense<0.000000e+00> : vector<128xf32>
    %67 = vector.multi_reduction <add>, %66, %cst_60 [0] : vector<2x128xf32> to vector<128xf32>
    %68 = vector.shape_cast %67 : vector<128xf32> to vector<1x128xf32>
    %69 = arith.addf %65, %68 : vector<1x128xf32>
    %c0_61 = arith.constant 0 : index
    %c0_62 = arith.constant 0 : index
    %c32_63 = arith.constant 32 : index
    %c0_64 = arith.constant 0 : index
    %70 = vector.load %arg5[%c0_61, %c0_62, %c32_63, %c0_64] : memref<1x1x64x128xf32, #tpu.memory_space<vmem>>, vector<1x1x1x128xf32>
    %71 = vector.shape_cast %70 : vector<1x1x1x128xf32> to vector<1x128xf32>
    %72 = vector.shape_cast %69 : vector<1x128xf32> to vector<1x1x1x128xf32>
    tpu.vector_store %arg5[%c0_61, %c0_62, %c32_63, %c0_64], %72 {strides = array<i32>} : memref<1x1x64x128xf32, #tpu.memory_space<vmem>>, vector<1x1x1x128xf32>,
    %c1_65 = arith.constant 1 : index
    %c0_66 = arith.constant 0 : index
    %c0_67 = arith.constant 0 : index
    %73 = vector.load %arg6[%c1_65, %c0_66, %c0_67] : memref<4x2x128xf32, #tpu.memory_space<vmem>>, vector<1x2x128xf32>
    %74 = vector.shape_cast %73 : vector<1x2x128xf32> to vector<2x128xf32>
    %75 = arith.mulf %74, %45 : vector<2x128xf32>
    %c1_i32 = arith.constant 1 : i32
    %76 = vector.broadcast %c1_i32 : i32 to vector<2x128xi32>
    %77 = arith.cmpi eq, %47, %76 : vector<2x128xi32>
    %78 = arith.extui %77 : vector<2x128xi1> to vector<2x128xi32>
    %79 = arith.sitofp %78 : vector<2x128xi32> to vector<2x128xf32>
    %c0_68 = arith.constant 0 : index
    %c0_69 = arith.constant 0 : index
    %c8 = arith.constant 8 : index
    %c0_70 = arith.constant 0 : index
    %80 = vector.load %arg5[%c0_68, %c0_69, %c8, %c0_70] : memref<1x1x64x128xf32, #tpu.memory_space<vmem>>, vector<1x1x1x128xf32>
    %81 = vector.shape_cast %80 : vector<1x1x1x128xf32> to vector<1x128xf32>
    %82 = arith.mulf %79, %75 : vector<2x128xf32>
    %cst_71 = arith.constant dense<0.000000e+00> : vector<128xf32>
    %83 = vector.multi_reduction <add>, %82, %cst_71 [0] : vector<2x128xf32> to vector<128xf32>
    %84 = vector.shape_cast %83 : vector<128xf32> to vector<1x128xf32>
    %85 = arith.addf %81, %84 : vector<1x128xf32>
    %c0_72 = arith.constant 0 : index
    %c0_73 = arith.constant 0 : index
    %c8_74 = arith.constant 8 : index
    %c0_75 = arith.constant 0 : index
    %86 = vector.load %arg5[%c0_72, %c0_73, %c8_74, %c0_75] : memref<1x1x64x128xf32, #tpu.memory_space<vmem>>, vector<1x1x1x128xf32>
    %87 = vector.shape_cast %86 : vector<1x1x1x128xf32> to vector<1x128xf32>
    %88 = vector.shape_cast %85 : vector<1x128xf32> to vector<1x1x1x128xf32>
    tpu.vector_store %arg5[%c0_72, %c0_73, %c8_74, %c0_75], %88 {strides = array<i32>} : memref<1x1x64x128xf32, #tpu.memory_space<vmem>>, vector<1x1x1x128xf32>,
    %c0_76 = arith.constant 0 : index
    %c0_77 = arith.constant 0 : index
    %c40 = arith.constant 40 : index
    %c0_78 = arith.constant 0 : index
    %89 = vector.load %arg5[%c0_76, %c0_77, %c40, %c0_78] : memref<1x1x64x128xf32, #tpu.memory_space<vmem>>, vector<1x1x1x128xf32>
    %90 = vector.shape_cast %89 : vector<1x1x1x128xf32> to vector<1x128xf32>
    %91 = arith.addf %75, %79 : vector<2x128xf32>
    %cst_79 = arith.constant dense<0.000000e+00> : vector<128xf32>
    %92 = vector.multi_reduction <add>, %91, %cst_79 [0] : vector<2x128xf32> to vector<128xf32>
    %93 = vector.shape_cast %92 : vector<128xf32> to vector<1x128xf32>
    %94 = arith.addf %90, %93 : vector<1x128xf32>
    %c0_80 = arith.constant 0 : index
    %c0_81 = arith.constant 0 : index
    %c40_82 = arith.constant 40 : index
    %c0_83 = arith.constant 0 : index
    %95 = vector.load %arg5[%c0_80, %c0_81, %c40_82, %c0_83] : memref<1x1x64x128xf32, #tpu.memory_space<vmem>>, vector<1x1x1x128xf32>
    %96 = vector.shape_cast %95 : vector<1x1x1x128xf32> to vector<1x128xf32>
    %97 = vector.shape_cast %94 : vector<1x128xf32> to vector<1x1x1x128xf32>
    tpu.vector_store %arg5[%c0_80, %c0_81, %c40_82, %c0_83], %97 {strides = array<i32>} : memref<1x1x64x128xf32, #tpu.memory_space<vmem>>, vector<1x1x1x128xf32>,
    %c2_84 = arith.constant 2 : index
    %c0_85 = arith.constant 0 : index
    %c0_86 = arith.constant 0 : index
    %98 = vector.load %arg6[%c2_84, %c0_85, %c0_86] : memref<4x2x128xf32, #tpu.memory_space<vmem>>, vector<1x2x128xf32>
    %99 = vector.shape_cast %98 : vector<1x2x128xf32> to vector<2x128xf32>
    %100 = arith.mulf %99, %45 : vector<2x128xf32>
    %c2_i32 = arith.constant 2 : i32
    %101 = vector.broadcast %c2_i32 : i32 to vector<2x128xi32>
    %102 = arith.cmpi eq, %47, %101 : vector<2x128xi32>
    %103 = arith.extui %102 : vector<2x128xi1> to vector<2x128xi32>
    %104 = arith.sitofp %103 : vector<2x128xi32> to vector<2x128xf32>
    %c0_87 = arith.constant 0 : index
    %c0_88 = arith.constant 0 : index
    %c16 = arith.constant 16 : index
    %c0_89 = arith.constant 0 : index
    %105 = vector.load %arg5[%c0_87, %c0_88, %c16, %c0_89] : memref<1x1x64x128xf32, #tpu.memory_space<vmem>>, vector<1x1x1x128xf32>
    %106 = vector.shape_cast %105 : vector<1x1x1x128xf32> to vector<1x128xf32>
    %107 = arith.mulf %104, %100 : vector<2x128xf32>
    %cst_90 = arith.constant dense<0.000000e+00> : vector<128xf32>
    %108 = vector.multi_reduction <add>, %107, %cst_90 [0] : vector<2x128xf32> to vector<128xf32>
    %109 = vector.shape_cast %108 : vector<128xf32> to vector<1x128xf32>
    %110 = arith.addf %106, %109 : vector<1x128xf32>
    %c0_91 = arith.constant 0 : index
    %c0_92 = arith.constant 0 : index
    %c16_93 = arith.constant 16 : index
    %c0_94 = arith.constant 0 : index
    %111 = vector.load %arg5[%c0_91, %c0_92, %c16_93, %c0_94] : memref<1x1x64x128xf32, #tpu.memory_space<vmem>>, vector<1x1x1x128xf32>
    %112 = vector.shape_cast %111 : vector<1x1x1x128xf32> to vector<1x128xf32>
    %113 = vector.shape_cast %110 : vector<1x128xf32> to vector<1x1x1x128xf32>
    tpu.vector_store %arg5[%c0_91, %c0_92, %c16_93, %c0_94], %113 {strides = array<i32>} : memref<1x1x64x128xf32, #tpu.memory_space<vmem>>, vector<1x1x1x128xf32>,
    %c0_95 = arith.constant 0 : index
    %c0_96 = arith.constant 0 : index
    %c48 = arith.constant 48 : index
    %c0_97 = arith.constant 0 : index
    %114 = vector.load %arg5[%c0_95, %c0_96, %c48, %c0_97] : memref<1x1x64x128xf32, #tpu.memory_space<vmem>>, vector<1x1x1x128xf32>
    %115 = vector.shape_cast %114 : vector<1x1x1x128xf32> to vector<1x128xf32>
    %116 = arith.addf %100, %104 : vector<2x128xf32>
    %cst_98 = arith.constant dense<0.000000e+00> : vector<128xf32>
    %117 = vector.multi_reduction <add>, %116, %cst_98 [0] : vector<2x128xf32> to vector<128xf32>
    %118 = vector.shape_cast %117 : vector<128xf32> to vector<1x128xf32>
    %119 = arith.addf %115, %118 : vector<1x128xf32>
    %c0_99 = arith.constant 0 : index
    %c0_100 = arith.constant 0 : index
    %c48_101 = arith.constant 48 : index
    %c0_102 = arith.constant 0 : index
    %120 = vector.load %arg5[%c0_99, %c0_100, %c48_101, %c0_102] : memref<1x1x64x128xf32, #tpu.memory_space<vmem>>, vector<1x1x1x128xf32>
    %121 = vector.shape_cast %120 : vector<1x1x1x128xf32> to vector<1x128xf32>
    %122 = vector.shape_cast %119 : vector<1x128xf32> to vector<1x1x1x128xf32>
    tpu.vector_store %arg5[%c0_99, %c0_100, %c48_101, %c0_102], %122 {strides = array<i32>} : memref<1x1x64x128xf32, #tpu.memory_space<vmem>>, vector<1x1x1x128xf32>,
    %c3_103 = arith.constant 3 : index
    %c0_104 = arith.constant 0 : index
    %c0_105 = arith.constant 0 : index
    %123 = vector.load %arg6[%c3_103, %c0_104, %c0_105] : memref<4x2x128xf32, #tpu.memory_space<vmem>>, vector<1x2x128xf32>
    %124 = vector.shape_cast %123 : vector<1x2x128xf32> to vector<2x128xf32>
    %125 = arith.mulf %124, %45 : vector<2x128xf32>
    %c3_i32 = arith.constant 3 : i32
    %126 = vector.broadcast %c3_i32 : i32 to vector<2x128xi32>
    %127 = arith.cmpi eq, %47, %126 : vector<2x128xi32>
    %128 = arith.extui %127 : vector<2x128xi1> to vector<2x128xi32>
    %129 = arith.sitofp %128 : vector<2x128xi32> to vector<2x128xf32>
    %c0_106 = arith.constant 0 : index
    %c0_107 = arith.constant 0 : index
    %c24 = arith.constant 24 : index
    %c0_108 = arith.constant 0 : index
    %130 = vector.load %arg5[%c0_106, %c0_107, %c24, %c0_108] : memref<1x1x64x128xf32, #tpu.memory_space<vmem>>, vector<1x1x1x128xf32>
    %131 = vector.shape_cast %130 : vector<1x1x1x128xf32> to vector<1x128xf32>
    %132 = arith.mulf %129, %125 : vector<2x128xf32>
    %cst_109 = arith.constant dense<0.000000e+00> : vector<128xf32>
    %133 = vector.multi_reduction <add>, %132, %cst_109 [0] : vector<2x128xf32> to vector<128xf32>
    %134 = vector.shape_cast %133 : vector<128xf32> to vector<1x128xf32>
    %135 = arith.addf %131, %134 : vector<1x128xf32>
    %c0_110 = arith.constant 0 : index
    %c0_111 = arith.constant 0 : index
    %c24_112 = arith.constant 24 : index
    %c0_113 = arith.constant 0 : index
    %136 = vector.load %arg5[%c0_110, %c0_111, %c24_112, %c0_113] : memref<1x1x64x128xf32, #tpu.memory_space<vmem>>, vector<1x1x1x128xf32>
    %137 = vector.shape_cast %136 : vector<1x1x1x128xf32> to vector<1x128xf32>
    %138 = vector.shape_cast %135 : vector<1x128xf32> to vector<1x1x1x128xf32>
    tpu.vector_store %arg5[%c0_110, %c0_111, %c24_112, %c0_113], %138 {strides = array<i32>} : memref<1x1x64x128xf32, #tpu.memory_space<vmem>>, vector<1x1x1x128xf32>,
    %c0_114 = arith.constant 0 : index
    %c0_115 = arith.constant 0 : index
    %c56 = arith.constant 56 : index
    %c0_116 = arith.constant 0 : index
    %139 = vector.load %arg5[%c0_114, %c0_115, %c56, %c0_116] : memref<1x1x64x128xf32, #tpu.memory_space<vmem>>, vector<1x1x1x128xf32>
    %140 = vector.shape_cast %139 : vector<1x1x1x128xf32> to vector<1x128xf32>
    %141 = arith.addf %125, %129 : vector<2x128xf32>
    %cst_117 = arith.constant dense<0.000000e+00> : vector<128xf32>
    %142 = vector.multi_reduction <add>, %141, %cst_117 [0] : vector<2x128xf32> to vector<128xf32>
    %143 = vector.shape_cast %142 : vector<128xf32> to vector<1x128xf32>
    %144 = arith.addf %140, %143 : vector<1x128xf32>
    %c0_118 = arith.constant 0 : index
    %c0_119 = arith.constant 0 : index
    %c56_120 = arith.constant 56 : index
    %c0_121 = arith.constant 0 : index
    %145 = vector.load %arg5[%c0_118, %c0_119, %c56_120, %c0_121] : memref<1x1x64x128xf32, #tpu.memory_space<vmem>>, vector<1x1x1x128xf32>
    %146 = vector.shape_cast %145 : vector<1x1x1x128xf32> to vector<1x128xf32>
    %147 = vector.shape_cast %144 : vector<1x128xf32> to vector<1x1x1x128xf32>
    tpu.vector_store %arg5[%c0_118, %c0_119, %c56_120, %c0_121], %147 {strides = array<i32>} : memref<1x1x64x128xf32, #tpu.memory_space<vmem>>, vector<1x1x1x128xf32>,
    return
  }
  func.func @transform_0(%arg0: i32, %arg1: i32, %arg2: i32) -> (i32, i32, i32, i32) {
    %c1_i32 = arith.constant 1 : i32
    %0 = arith.muli %arg1, %c1_i32 : i32
    %1 = arith.addi %0, %arg2 : i32
    %c0_i32 = arith.constant 0 : i32
    %c0_i32_0 = arith.constant 0 : i32
    %c0_i32_1 = arith.constant 0 : i32
    return %arg0, %c0_i32, %1, %c0_i32_0 : i32, i32, i32, i32
  }
  func.func @transform_1(%arg0: i32, %arg1: i32, %arg2: i32) -> (i32, i32, i32, i32) {
    %c1_i32 = arith.constant 1 : i32
    %0 = arith.muli %arg1, %c1_i32 : i32
    %1 = arith.addi %0, %arg2 : i32
    %c0_i32 = arith.constant 0 : i32
    %c0_i32_0 = arith.constant 0 : i32
    %c0_i32_1 = arith.constant 0 : i32
    return %arg0, %c0_i32, %1, %c0_i32_0 : i32, i32, i32, i32
  }
  func.func @transform_2(%arg0: i32, %arg1: i32, %arg2: i32) -> (i32, i32, i32, i32) {
    %c0_i32 = arith.constant 0 : i32
    %c0_i32_0 = arith.constant 0 : i32
    %c0_i32_1 = arith.constant 0 : i32
    return %arg0, %arg1, %c0_i32, %c0_i32_0 : i32, i32, i32, i32
  }
}

</mosaic_0001>

<bundles_post_ra>
// kernel: tpu_custom_call.1
= control target key start
LH: loop header
LB: loop body
LE: loop exit
PB: predicated region body
PF: predicated region fallthrough
CT: control target
= control target key end

     0   :  { %7 = vsyncpa [#allocation4], 0  ;;  %s1062_s0 = inlined_call_operand.hbm [shape: f32[2,4,2,128], index: 0, kind: input, shape index: {}]   ;;  %s1063_s1 = inlined_call_operand.hbm [shape: s32[2,1,2,128], index: 1, kind: input, shape index: {}]   ;;  %s1064_s2 = inlined_call_operand.hbm [shape: f32[2,1,64,128], index: 2, kind: output, shape index: {}]  }
   0x1   :  { %9 = vsyncpa [#allocation4 + $0x1], 0 }
   0x2   :  { %10 = vsyncpa [#allocation7], 0 }
   0x3   :  { %12 = vsyncpa [#allocation7 + $0x1], 0 }
   0x4   :  { %13 = vsyncpa [#allocation5], 0 }
   0x5   :  { %15 = vsyncpa [#allocation5 + $0x1], 0  ;;  %s806_s9 = smov 0   ;;  %s808_s10 = smov 0  }
   0x6   :  { %s810_s11 = smov 0   ;;  %s812_s12 = smov 0  }
   0x7   :  { %s814_s13 = smov 0   ;;  %s816_s14 = smov 0  }
   0x8 LB: > { %s523_s15 = sadd.s32 4294967295, %s781_s14   ;;  %s524_s16 = sadd.s32 4294967294, %s781_s14   ;;  %s781_s14 = sphi %s816_s14, %s21_s14   ;;  %s777_s13 = sphi %s814_s13, %s1083_s13   ;;  %s773_s12 = sphi %s812_s12, %s1082_s12   ;;  %s769_s11 = sphi %s810_s11, %s1081_s11   ;;  %s765_s10 = sphi %s808_s10, %s1080_s10   ;;  %s761_s9 = sphi %s806_s9, %s1079_s9  }
   0x9   : > { %s40_s17 = sadd.s32 1, %s777_s13  ;;  %s51_s18 = sadd.s32 1, %s769_s11 }
   0xa   : > { %p42_p0 = scmp.ge.s32.totalorder %s40_s17, 2  ;;  %p58_p1 = scmp.ne.s32.totalorder %s769_s11, %s765_s10 }
   0xb   : > { %p59_p2 = scmp.eq.s32.totalorder %s781_s14, 0  ;;  %p64_p3 = scmp.ne.s32.totalorder %s765_s10, %s761_s9 }
   0xc   : > { %s1085_s17 = smov (%p42_p0, %s40_s17), 0  ;;  %p65_p5 = scmp.eq.s32.totalorder %s523_s15, 0 }
   0xd   : > { %p847_p4 = por %p59_p2, %p58_p1  ;;  %s46_s20 = ssub.s32 %s777_s13, %s1085_s17 }
   0xe   : > { %p120_p6 = scmp.eq.s32.totalorder %s523_s15, 1  ;;  %p49_p7 = scmp.eq.s32.totalorder %s46_s20, 0 }
   0xf   : > { %p853_p8 = por %p65_p5, %p64_p3  ;;  %p126_p10 = scmp.eq.s32.totalorder %s524_s16, 1 }
  0x10   : > { %p857_p9 = por %p120_p6, %p58_p1  ;;  %p570_p13 = scmp.lt.s32.totalorder %s781_s14, 2 }
  0x11   : > { %s1068_s21 = scalar_select %p853_p8, 1, 0 }
  0x12   : > { %s1069_s22 = scalar_select %p857_p9, 1, 0 }
  0x13   : > { %s862_s23 = scalar_select %p49_p7, %s769_s11, %s51_s18  }
  0x14   : > { %p864_p11 = por %p126_p10, %p64_p3  ;;  %s871_s25 = sand.u32 1, %s769_s11  }
  0x15   : > { %s527_s26 = sshll.u32 %s871_s25, 3  ;;  %s551_s27 = sshll.u32 %s777_s13, 7 }
  0x16   : > { %s1070_s24 = scalar_select %p864_p11, 1, 0 }
  0x17   : > { %s878_s30 = scalar_lea.hbm %s1062_s0, %s551_s27  ;;  %s150_s3 = scalar_lea.vmem [#allocation3], %s527_s26 }
  0x18   : > { %s159_s4 = sshll.u32 %s150_s3, 4  ;;  %p884_p0 = pnand %p570_p13, %p847_p4  ;;  %s880_s4 = int_to_ptr.vmem [resolvable:$true] %s159_s4 }
  0x19   : > { %s147_s6 = scalar_lea.sflag [#allocation4], %s871_s25  ;;  %s635_s7 = scalar_lea.hbm %s878_s30, 128 }
  0x1a   : > { %p636_p2 = scmp.ne.s32.totalorder %s878_s30, %s635_s7  ;;  %p637_p3 = pneg %p884_p0 }
  0x1b   : > { %s640_s16 = scalar_lea.hbm %s1062_s0, 256  ;;  %p641_p4 = scmp.lt.u32.totalorder %s878_s30, %s1062_s0 }
  0x1c   : > { %p638_p5 = pnand %p637_p3, %p636_p2  ;;  %p642_p7 = scmp.lt.u32.totalorder %s640_s16, %s635_s7 }
  0x1d   : > { %p644_p13 = scmp.lt.u32.totalorder %s635_s7, %s878_s30 }
  0x1e   : > { %p639_p6 = pneg %p638_p5  ;;  %p643_p10 = por %p642_p7, %p641_p4 }
  0x20   : > { %p645_p12 = por %p644_p13, %p643_p10 }
  0x22   : > { %p646_p1 = pnand %p645_p12, %p639_p6 }
  0x24   : > { %649 = shalt.err (!%p646_p1)
}
  0x25   : > { %s650_s20 = scalar_lea.vmem %s880_s4, 128  ;;  %s783_s26 = smov [#allocation3]  }
  0x26   : > { %p651_p2 = scmp.ne.s32.totalorder %s880_s4, %s650_s20  ;;  %s655_s27 = sshll.u32 %s783_s26, 4  ;;  %s656_s27 = int_to_ptr.vmem [resolvable:$false] %s655_s27 }
  0x27   : > { %s657_s28 = scalar_lea.vmem %s656_s27, 256  ;;  %p658_p9 = scmp.lt.s32.totalorder %s880_s4, %s656_s27 }
  0x28   : > { %p653_p5 = pnand %p651_p2, %p637_p3  ;;  %p659_p4 = scmp.lt.s32.totalorder %s657_s28, %s650_s20 }
  0x2a   : > { %p654_p11 = pneg %p653_p5  ;;  %p660_p7 = por %p659_p4, %p658_p9 }
  0x2c   : > { %p661_p10 = pnand %p660_p7, %p654_p11 }
  0x2e   : > { %664 = shalt.err (!%p661_p10)
}
  0x2f   : > { %s784_s29 = smov 32   ;;  %s785_s3 = smov 2  }
  0x30   : > { %562 = dma.hbm_to_vmem [thread:$0]  (!%p884_p0), %s878_s30, 128, %s880_s4, %s147_s6, %s784_s29, %s784_s29, %s785_s3  }
  0x31   : > { %p187_p12 = scmp.lt.s32.totalorder %s781_s14, 3  ;;  %s530_s7 = sshll.u32 %s871_s25, 1 }
  0x32   : > { %s531_s8 = sshll.u32 %s777_s13, 5  ;;  %p1072_p9 = scmp.ge.s32.totalorder %s781_s14, 1 }
  0x33   : > { %s929_s19 = scalar_lea.hbm %s1063_s1, %s531_s8  ;;  %s173_s20 = scalar_lea.vmem [#allocation6], %s530_s7 }
  0x34   : > { %p922_p11 = pnand %p1072_p9, %p187_p12  ;;  %s182_s26 = sshll.u32 %s173_s20, 4  ;;  %s183_s26 = int_to_ptr.vmem [resolvable:$true] %s182_s26 }
  0x35   : > { %s170_s30 = scalar_lea.sflag [#allocation7], %s871_s25  ;;  %s665_s4 = scalar_lea.hbm %s929_s19, 32 }
  0x36   : > { %s1073_s15 = scalar_select %p922_p11, 1, 0 }
  0x37   : > { %p666_p1 = scmp.ne.s32.totalorder %s929_s19, %s665_s4  ;;  %s670_s28 = scalar_lea.hbm %s1063_s1, 64 }
  0x38   : > { %p671_p2 = scmp.lt.u32.totalorder %s929_s19, %s1063_s1  ;;  %p672_p5 = scmp.lt.u32.totalorder %s670_s28, %s665_s4 }
  0x39   : > { %p668_p6 = pnand %p666_p1, %p637_p3  ;;  %p674_p7 = scmp.lt.u32.totalorder %s665_s4, %s929_s19 }
  0x3a   : > { %p673_p4 = por %p672_p5, %p671_p2 }
  0x3b   : > { %p669_p13 = pneg %p668_p6 }
  0x3c   : > { %p675_p10 = por %p674_p7, %p673_p4 }
  0x3e   : > { %p676_p12 = pnand %p675_p10, %p669_p13 }
  0x40   : > { %679 = shalt.err (!%p676_p12)
}
  0x41   : > { %s680_s25 = scalar_lea.vmem %s183_s26, 32  ;;  %s786_s7 = smov [#allocation6]  }
  0x42   : > { %p681_p9 = scmp.ne.s32.totalorder %s183_s26, %s680_s25  ;;  %s685_s8 = sshll.u32 %s786_s7, 4  ;;  %s686_s8 = int_to_ptr.vmem [resolvable:$false] %s685_s8 }
  0x43   : > { %s687_s16 = scalar_lea.vmem %s686_s8, 64  ;;  %p688_p8 = scmp.lt.s32.totalorder %s183_s26, %s686_s8 }
  0x44   : > { %p683_p1 = pnand %p681_p9, %p637_p3  ;;  %p689_p11 = scmp.lt.s32.totalorder %s687_s16, %s680_s25 }
  0x46   : > { %p684_p6 = pneg %p683_p1  ;;  %p690_p2 = por %p689_p11, %p688_p8 }
  0x48   : > { %p691_p5 = pnand %p690_p2, %p684_p6 }
  0x4a   : > { %694 = shalt.err (!%p691_p5)
}
  0x4b   : > { %565 = dma.hbm_to_vmem [thread:$0]  (!%p884_p0), %s929_s19, 32, %s183_s26, %s170_s30  }
  0x4c   : > { %p1074_p13 = scmp.ne.s32.totalorder %s1073_s15, 0 }
  0x4d   : > { %s954_s18 = sand.u32 (!%p1074_p13), 1, %s765_s10   ;;  %p1075_p3 = scmp.ne.s32.totalorder (!%p1074_p13), %s1068_s21, 0 }
  0x4e   : > { %191 = sbr.rel (%p1074_p13) target bundleno = 168 (0xa8), region = 28  ;;  %s533_s20 = sshll.u32 (!%p1074_p13), %s954_s18, 3 }
  0x4f   : > { %s194_s4 = scalar_lea.sflag (!%p1074_p13), [#allocation4], %s954_s18  ;;  %s197_s6 = scalar_lea.vmem (!%p1074_p13), [#allocation3], %s533_s20 }
  0x55   : > { %748 = dma.done.wait (%p1075_p3), %s194_s4, 128  }
  0x56   : > { %750 = vsyncadd (%p1075_p3), %s194_s4, 4294967168  ;;  %s534_s5 = sshll.u32 %s954_s18, 1  ;;  %s203_s15 = scalar_lea.sflag [#allocation7], %s954_s18 }
  0x57   : > { %s964_s19 = scalar_lea.vmem [#allocation6], %s534_s5 }
  0x58   : > { %752 = dma.done.wait (%p1075_p3), %s203_s15, 32  }
  0x59   : > { %754 = vsyncadd (%p1075_p3), %s203_s15, 4294967264  ;;  %s535_s26 = sshll.u32 %s954_s18, 6  ;;  %v787_v0 = vmov 0.0   ;;  %v246_v1 = vld [vmem:[%s197_s6] sm:$0x3]  ;;  %vm290_vm4 = vcmask 1041408  }
  0x5a   : > { %s971_s30 = scalar_lea.vmem [#allocation8], %s535_s26  ;;  %v536_v2 = vld [vmem:[%s197_s6 + $0x2] sm:$0x3]  ;;  %v537_v3 = vld [vmem:[%s197_s6 + $0x4] sm:$0x3]  ;;  %s552_s21 = sshll.u32 %s773_s12, 10 }
  0x5b   : > { %238 = vst [vmem:[%s971_s30] sm:$0xff] %v787_v0  ;;  %239 = vst [vmem:[%s971_s30 + $0x8] sm:$0xff] %v787_v0  ;;  %v249_v4 = vmax.f32 %v246_v1, %v536_v2  ;;  %v538_v5 = vld [vmem:[%s197_s6 + $0x6] sm:$0x3]  ;;  %v539_v7 = vld [vmem:[%s197_s6 + $0x2] sm:$0x3]  ;;  %s408_s27 = sshll.u32 %s971_s30, 4  ;;  %s1007_s29 = scalar_lea.hbm %s1064_s2, %s552_s21  ;;  %s1009_s27 = int_to_ptr.vmem [resolvable:$true] %s408_s27 }
  0x5c   : > { %240 = vst [vmem:[%s971_s30 + $0x10] sm:$0xff] %v787_v0  ;;  %241 = vst [vmem:[%s971_s30 + $0x18] sm:$0xff] %v787_v0  ;;  %v540_v8 = vld [vmem:[%s197_s6 + $0x4] sm:$0x3]  ;;  %v541_v9 = vld [vmem:[%s197_s6 + $0x6] sm:$0x3] }
  0x5d   : > { %242 = vst [vmem:[%s971_s30 + $0x20] sm:$0xff] %v787_v0  ;;  %243 = vst [vmem:[%s971_s30 + $0x28] sm:$0xff] %v787_v0  ;;  %v252_v6 = vmax.f32 %v249_v4, %v537_v3  ;;  %v282_v26 = vld [vmem:[%s964_s19] sm:$0x3]  ;;  %s393_s3 = scalar_lea.sflag [#allocation5], %s954_s18  ;;  %s695_s25 = scalar_lea.vmem %s1009_s27, 1024 }
  0x5e   : > { %244 = vst [vmem:[%s971_s30 + $0x30] sm:$0xff] %v787_v0  ;;  %245 = vst [vmem:[%s971_s30 + $0x38] sm:$0xff] %v787_v0  ;;  %vm285_vm0 = vcmp.eq.s32.totalorder %v282_v26, 0  ;;  %vm313_vm1 = vcmp.eq.s32.totalorder %v282_v26, 1  ;;  %vm340_vm2 = vcmp.eq.s32.totalorder %v282_v26, 2  ;;  %vm367_vm3 = vcmp.eq.s32.totalorder %v282_v26, 3  ;;  %p696_p8 = scmp.ne.s32.totalorder %s1009_s27, %s695_s25 }
  0x5f   : > { %v255_v10 = vmax.f32 %v252_v6, %v538_v5  ;;  %v542_v32 = vsel %vm285_vm0, 1.0, %v787_v0  ;;  %v543_v33 = vsel %vm313_vm1, 1.0, %v787_v0  ;;  %v544_v34 = vsel %vm340_vm2, 1.0, %v787_v0  ;;  %p1076_p0 = scmp.ne.s32.totalorder %s1069_s22, 0  ;;  %s788_s7 = smov [#allocation8]  }
  0x60   : > { %v545_v35 = vsel %vm367_vm3, 1.0, %v787_v0  ;;  %s699_s8 = sshll.u32 %s788_s7, 4  ;;  %s700_s8 = int_to_ptr.vmem [resolvable:$false] %s699_s8 }
  0x61   : > { %v256_v11 = vsub.f32 %v246_v1, %v255_v10  ;;  %v261_v12 = vsub.f32 %v539_v7, %v255_v10  ;;  %v268_v13 = vsub.f32 %v540_v8, %v255_v10  ;;  %v275_v14 = vsub.f32 %v541_v9, %v255_v10  ;;  %p697_p11 = pnand %p696_p8, %p1076_p0  ;;  %s701_s16 = scalar_lea.vmem %s700_s8, 2048 }
  0x62   : > { %v316_v26 = vld [vmem:[%s971_s30 + $0x8] sm:$0x1]  ;;  %p702_p7 = scmp.lt.s32.totalorder %s1009_s27, %s700_s8  ;;  %p703_p10 = scmp.lt.s32.totalorder %s701_s16, %s695_s25 }
  0x63   : > { %v257_v15 = vmul.f32 1.442695, %v256_v11  ;;  %v262_v16 = vmul.f32 1.442695, %v261_v12  ;;  %v269_v17 = vmul.f32 1.442695, %v268_v13  ;;  %p698_p4 = pneg %p697_p11 }
  0x64   : > { %v276_v18 = vmul.f32 1.442695, %v275_v14  ;;  %p704_p12 = por %p703_p10, %p702_p7 }
  0x65   : > { %625 = vpow2.f32 %v257_v15 }
  0x66   : > { %627 = vpow2.f32 %v262_v16  ;;  %p705_p9 = pnand %p704_p12, %p698_p4 }
  0x67   : > { %629 = vpow2.f32 %v269_v17 }
  0x68   : > { %631 = vpow2.f32 %v276_v18 }
  0x6f   : > { %v626_v19 = vpop.eup %625 }
  0x70   : > { %v628_v20 = vpop.eup %627  ;;  %259 = vst [vmem:[#allocation2] sm:$0x3] %v626_v19 }
  0x71   : > { %v630_v21 = vpop.eup %629  ;;  %265 = vst [vmem:[#allocation2 + $0x2] sm:$0x3] %v628_v20  ;;  %v266_v22 = vadd.f32 %v628_v20, %v626_v19  ;;  %v288_v20 = vld [vmem:[%s971_s30] sm:$0x1] }
  0x72   : > { %v632_v23 = vpop.eup %631  ;;  %272 = vst [vmem:[#allocation2 + $0x4] sm:$0x3] %v630_v21 }
  0x73   : > { %v273_v24 = vadd.f32 %v630_v21, %v266_v22  ;;  %279 = vst [vmem:[#allocation2 + $0x6] sm:$0x3] %v632_v23 }
  0x75   : > { %v280_v25 = vadd.f32 %v632_v23, %v273_v24 }
  0x77   : > { %633 = vrcp.f32 %v280_v25  ;;  %v283_v27 = vld [vmem:[#allocation2] sm:$0x3]  ;;  %v300_v25 = vld [vmem:[%s971_s30 + $0x20] sm:$0x1] }
  0x78   : > { %v311_v28 = vld [vmem:[#allocation2 + $0x2] sm:$0x3] }
  0x79   : > { %v338_v29 = vld [vmem:[#allocation2 + $0x4] sm:$0x3] }
  0x7a   : > { %v365_v30 = vld [vmem:[#allocation2 + $0x6] sm:$0x3] }
  0x81   : > { %v634_v31 = vpop.eup %633 }
  0x82   : > { %v284_v36 = vmul.f32 %v634_v31, %v283_v27  ;;  %v312_v37 = vmul.f32 %v634_v31, %v311_v28  ;;  %v339_v38 = vmul.f32 %v634_v31, %v338_v29  ;;  %v366_v39 = vmul.f32 %v634_v31, %v365_v30  ;;  %v327_v27 = vld [vmem:[%s971_s30 + $0x28] sm:$0x1] }
  0x84   : > { %v289_v40 = vmul.f32 %v542_v32, %v284_v36  ;;  %v301_v41 = vadd.f32 %v542_v32, %v284_v36  ;;  %v317_v42 = vmul.f32 %v543_v33, %v312_v37  ;;  %v328_v43 = vadd.f32 %v543_v33, %v312_v37  ;;  %v343_v36 = vld [vmem:[%s971_s30 + $0x10] sm:$0x1] }
  0x85   : > { %v344_v44 = vmul.f32 %v544_v34, %v339_v38  ;;  %v355_v45 = vadd.f32 %v544_v34, %v339_v38  ;;  %v371_v46 = vmul.f32 %v545_v35, %v366_v39  ;;  %v382_v47 = vadd.f32 %v545_v35, %v366_v39 }
  0x86   : > { %v291_v48 = vsel %vm290_vm4, %v289_v40, 0.0  ;;  %v302_v49 = vsel %vm290_vm4, %v301_v41, 0.0  ;;  %v318_v50 = vsel %vm290_vm4, %v317_v42, 0.0  ;;  %v329_v51 = vsel %vm290_vm4, %v328_v43, 0.0 }
  0x87   : > { %v292_v52 = vrot.slane %v291_v48, 4  ;;  %v303_v53 = vrot.slane %v302_v49, 4  ;;  %v319_v54 = vrot.slane %v318_v50, 4  ;;  %v330_v55 = vrot.slane %v329_v51, 4 }
  0x88   : > { %v345_v56 = vsel %vm290_vm4, %v344_v44, 0.0  ;;  %v356_v57 = vsel %vm290_vm4, %v355_v45, 0.0  ;;  %v372_v58 = vsel %vm290_vm4, %v371_v46, 0.0  ;;  %v383_v59 = vsel %vm290_vm4, %v382_v47, 0.0  ;;  %v354_v45 = vld [vmem:[%s971_s30 + $0x30] sm:$0x1] }
  0x89   : > { %v293_v60 = vadd.f32 %v292_v52, %v291_v48  ;;  %v304_v61 = vadd.f32 %v303_v53, %v302_v49  ;;  %v320_v62 = vadd.f32 %v319_v54, %v318_v50  ;;  %v331_v63 = vadd.f32 %v330_v55, %v329_v51  ;;  %v370_v46 = vld [vmem:[%s971_s30 + $0x18] sm:$0x1] }
  0x8a   : > { %v346_v0 = vrot.slane %v345_v56, 4  ;;  %v357_v1 = vrot.slane %v356_v57, 4  ;;  %v373_v2 = vrot.slane %v372_v58, 4  ;;  %v384_v3 = vrot.slane %v383_v59, 4  ;;  %v381_v47 = vld [vmem:[%s971_s30 + $0x38] sm:$0x1] }
  0x8b   : > { %v294_v4 = vrot.slane %v293_v60, 2  ;;  %v305_v5 = vrot.slane %v304_v61, 2  ;;  %v321_v6 = vrot.slane %v320_v62, 2  ;;  %v332_v7 = vrot.slane %v331_v63, 2 }
  0x8c   : > { %v347_v8 = vadd.f32 %v346_v0, %v345_v56  ;;  %v358_v9 = vadd.f32 %v357_v1, %v356_v57  ;;  %v374_v10 = vadd.f32 %v373_v2, %v372_v58  ;;  %v385_v11 = vadd.f32 %v384_v3, %v383_v59 }
  0x8d   : > { %v295_v12 = vadd.f32 %v294_v4, %v293_v60  ;;  %v306_v13 = vadd.f32 %v305_v5, %v304_v61  ;;  %v322_v14 = vadd.f32 %v321_v6, %v320_v62  ;;  %v333_v15 = vadd.f32 %v332_v7, %v331_v63 }
  0x8e   : > { %v348_v16 = vrot.slane %v347_v8, 2  ;;  %v359_v17 = vrot.slane %v358_v9, 2  ;;  %v375_v18 = vrot.slane %v374_v10, 2  ;;  %v386_v19 = vrot.slane %v385_v11, 2 }
  0x8f   : > { %v296_v21 = vrot.slane %v295_v12, 1  ;;  %v307_v22 = vrot.slane %v306_v13, 1  ;;  %v323_v23 = vrot.slane %v322_v14, 1  ;;  %v334_v24 = vrot.slane %v333_v15, 1 }
  0x90   : > { %v349_v28 = vadd.f32 %v348_v16, %v347_v8  ;;  %v360_v29 = vadd.f32 %v359_v17, %v358_v9  ;;  %v376_v30 = vadd.f32 %v375_v18, %v374_v10  ;;  %v387_v31 = vadd.f32 %v386_v19, %v385_v11 }
  0x91   : > { %v297_v32 = vadd.f32 %v296_v21, %v295_v12  ;;  %v308_v33 = vadd.f32 %v307_v22, %v306_v13  ;;  %v324_v34 = vadd.f32 %v323_v23, %v322_v14  ;;  %v335_v35 = vadd.f32 %v334_v24, %v333_v15 }
  0x92   : > { %v350_v37 = vrot.slane %v349_v28, 1  ;;  %v361_v38 = vrot.slane %v360_v29, 1  ;;  %v377_v39 = vrot.slane %v376_v30, 1  ;;  %v388_v40 = vrot.slane %v387_v31, 1 }
  0x93   : > { %v298_v41 = vadd.f32 %v297_v32, %v288_v20  ;;  %v309_v42 = vadd.f32 %v308_v33, %v300_v25  ;;  %v325_v43 = vadd.f32 %v324_v34, %v316_v26  ;;  %v336_v44 = vadd.f32 %v335_v35, %v327_v27 }
  0x94   : > { %v351_v48 = vadd.f32 %v350_v37, %v349_v28  ;;  %v362_v49 = vadd.f32 %v361_v38, %v360_v29  ;;  %v378_v50 = vadd.f32 %v377_v39, %v376_v30  ;;  %v389_v51 = vadd.f32 %v388_v40, %v387_v31 }
  0x95   : > { %299 = vst [vmem:[%s971_s30] sm:$0x1] %v298_v41  ;;  %310 = vst [vmem:[%s971_s30 + $0x20] sm:$0x1] %v309_v42 }
  0x96   : > { %326 = vst [vmem:[%s971_s30 + $0x8] sm:$0x1] %v325_v43  ;;  %337 = vst [vmem:[%s971_s30 + $0x28] sm:$0x1] %v336_v44  ;;  %v352_v52 = vadd.f32 %v351_v48, %v343_v36  ;;  %v363_v53 = vadd.f32 %v362_v49, %v354_v45  ;;  %v379_v54 = vadd.f32 %v378_v50, %v370_v46 }
  0x97   : > { %v390_v55 = vadd.f32 %v389_v51, %v381_v47 }
  0x98   : > { %353 = vst [vmem:[%s971_s30 + $0x10] sm:$0x1] %v352_v52  ;;  %364 = vst [vmem:[%s971_s30 + $0x30] sm:$0x1] %v363_v53 }
  0x99   : > { %380 = vst [vmem:[%s971_s30 + $0x18] sm:$0x1] %v379_v54  ;;  %391 = vst [vmem:[%s971_s30 + $0x38] sm:$0x1] %v390_v55 }
  0x9a   : > { %708 = shalt.err (!%p705_p9)
}
  0x9b   : > { %s709_s20 = scalar_lea.hbm %s1007_s29, 1024  ;;  %s713_s5 = scalar_lea.hbm %s1064_s2, 2048 }
  0x9c   : > { %p710_p1 = scmp.ne.s32.totalorder %s1007_s29, %s709_s20  ;;  %p714_p5 = scmp.lt.u32.totalorder %s1007_s29, %s1064_s2 }
  0x9d   : > { %p715_p13 = scmp.lt.u32.totalorder %s713_s5, %s709_s20  ;;  %p717_p8 = scmp.lt.u32.totalorder %s709_s20, %s1007_s29 }
  0x9e   : > { %p711_p6 = pnand %p710_p1, %p1076_p0 }
  0x9f   : > { %p716_p3 = por %p715_p13, %p714_p5 }
  0xa0   : > { %p712_p2 = pneg %p711_p6 }
  0xa1   : > { %p718_p11 = por %p717_p8, %p716_p3 }
  0xa3   : > { %p719_p4 = pnand %p718_p11, %p712_p2 }
  0xa5   : > { %722 = shalt.err (!%p719_p4)
}
  0xa6   : > { %s789_s26 = smov 128   ;;  %s790_s30 = smov 8  }
  0xa7   : > { %557 = dma.vmem_to_hbm [thread:$0]  (%p1076_p0), %s1009_s27, 1024, %s1007_s29, %s393_s3, %s789_s26, %s789_s26, %s790_s30  }
  0xa8 PF: > { %s423_s21 = sand.u32 1, %s761_s9   ;;  %p1077_p7 = scmp.ne.s32.totalorder %s1070_s24, 0 }
  0xa9   : > { %p1078_p10 = scmp.ge.s32.totalorder %s781_s14, 2  ;;  %s424_s12 = scalar_lea.sflag [#allocation5], %s423_s21 }
  0xab   : > { %p567_p12 = pnand %p1078_p10, %p1077_p7 }
  0xad   : > { %756 = dma.done.wait (!%p567_p12), %s424_s12, 1024  }
  0xae   : > { %758 = vsyncadd (!%p567_p12), %s424_s12, 4294966272  ;;  %s21_s14 = sadd.s32 1, %s781_s14   ;;  %s1079_s9 = smov %s765_s10 }
  0xaf   : > { %p18_p9 = scmp.ge.s32.totalorder %s21_s14, 4   ;;  %s1080_s10 = smov %s769_s11 }
  0xb0   : > { %s1081_s11 = smov %s862_s23  ;;  %s1082_s12 = smov %s777_s13 }
  0xb1   : > { %s1083_s13 = smov %s1085_s17  ;;  %20 = sbr.rel (!%p18_p9) target bundleno = 8 (0x8), region = 96 }
  0xb8   :  { %429 = vsyncpa [#allocation4], 1 }
  0xb9   :  { %431 = vsyncpa [#allocation4 + $0x1], 1 }
  0xba   :  { %432 = vsyncpa [#allocation7], 1 }
  0xbb   :  { %434 = vsyncpa [#allocation7 + $0x1], 1 }
  0xbc   :  { %435 = vsyncpa [#allocation5], 1 }
  0xbd   :  { %437 = vsyncpa [#allocation5 + $0x1], 1 }

</bundles_post_ra>
